<compile_context>
chip_gen: v7x
topology: tpu7x:2x2x1
jax: 0.10.0
libtpu: 0.0.40
codegen_flags: <defaults>
</compile_context>

<pallas_src>
import functools

import jax
import jax.numpy as jnp
from jax.experimental import pallas as pl
from jax.experimental.pallas import tpu as pltpu


def _round_up(x, m):
    return ((x + m - 1) // m) * m


def _pick_tiling(feature_dim, padded_classes, nominal_batch=256):
    """Generation-aware reduction tile / VMEM limit selection."""
    try:
        phys = pltpu.get_tpu_info().vmem_capacity_bytes
    except Exception:  # interpret mode / older jax
        phys = 128 * 1024 * 1024
    # <=64 MiB scoped on v5e/v6e (128 MiB physical); <=32 MiB on v7x (64 MiB).
    vmem_limit = min(64 * 1024 * 1024, phys // 2)
    # Resident VMEM: f32 logits + mix matrix + bias + labels (small).
    resident = (nominal_batch * padded_classes * 4
                + nominal_batch * nominal_batch * 4
                + padded_classes * 4
                + nominal_batch * 8)
    budget = int(vmem_limit * 0.75) - resident
    # Double-buffered bf16 x tile (B, tk) + bf16 W tile (tk, Kp) per K step.
    per_k_bytes = 2 * 2 * (nominal_batch + padded_classes)
    tile_k = budget // per_k_bytes
    tile_k = max(512, min(8192, tile_k))
    tile_k = (tile_k // 128) * 128
    tile_k = min(tile_k, _round_up(feature_dim, 128))
    padded_dim = _round_up(feature_dim, tile_k)
    return tile_k, padded_dim, vmem_limit


# ---------------------------------------------------------------------------
# Fused kernel: raw GEMM reduction -> (brightness+MixUp) mix -> bias -> mixed CE
# Grid: (num_k_tiles,) over the flattened-feature reduction axis ("arbitrary")
# ---------------------------------------------------------------------------
def _fused_kernel(lam_ref, mix_ref, x_ref, w_ref, b_ref, ya_ref, yb_ref,
                  logit_ref, loss_ref, *, num_classes):
    k = pl.program_id(0)

    @pl.when(k == 0)
    def _():
        logit_ref[...] = jnp.zeros_like(logit_ref)

    # Raw classifier GEMM on this K tile (bf16 operands, f32 accumulation),
    # accumulated directly into the VMEM-resident logits output (no scratch).
    logit_ref[...] += jnp.dot(x_ref[...], w_ref[...],
                              preferred_element_type=jnp.float32)

    @pl.when(k == pl.num_programs(0) - 1)
    def _():
        lam = lam_ref[0]
        # Associativity hoist: (mix @ x) @ W == mix @ (x @ W).
        # Bias is added AFTER the mix (matches the original module).
        # NOTE: the f32 mix matmul lowers to multi-pass bf16 on v5e/v6e MXUs;
        # compare vs a f32 reference with loose (~1e-2 rel) tolerance.
        logits = jnp.dot(mix_ref[...], logit_ref[...],
                         preferred_element_type=jnp.float32) + b_ref[...]
        logit_ref[...] = logits

        bsz, kp = logits.shape
        col = jax.lax.broadcasted_iota(jnp.int32, (bsz, kp), 1)
        valid_col = col < num_classes
        # Mask padded class columns out of the softmax normalizer.
        masked = jnp.where(valid_col, logits, jnp.float32(-1e30))
        m = jnp.max(masked, axis=-1, keepdims=True)
        z = masked - m
        lse = jnp.log(jnp.sum(jnp.where(valid_col, jnp.exp(z), 0.0),
                              axis=-1, keepdims=True))
        logp = z - lse

        # Mixed cross entropy at the integer label columns:
        #   loss = mean( lam*CE(logits, y) + (1-lam)*CE(logits, y_perm) )
        ce_a = -jnp.sum(jnp.where(col == ya_ref[...], logp, 0.0),
                        axis=-1, keepdims=True)
        ce_b = -jnp.sum(jnp.where(col == yb_ref[...], logp, 0.0),
                        axis=-1, keepdims=True)
        mixed_ce = lam * ce_a + (1.0 - lam) * ce_b          # (B, 1)
        loss_ref[...] = jnp.broadcast_to(jnp.sum(mixed_ce) / bsz, (1, 1))


def progressive_forward_pallas(lam, mix_mat, x_bf16, w_pad, b_pad, ya, yb,
                               *, num_classes, tile_k, vmem_limit):
    bsz, dp = x_bf16.shape
    kp = w_pad.shape[1]
    nk = dp // tile_k

    kernel = functools.partial(_fused_kernel, num_classes=num_classes)
    # TODO(synk): a v7x class-axis "parallel" grid dimension (second TC) is not
    # implemented because the fused CE needs the full logits row for the
    # softmax; the kernel is HBM-bound so the expected gain is modest.
    logits, loss = pl.pallas_call(
        kernel,
        out_shape=(jax.ShapeDtypeStruct((bsz, kp), jnp.float32),
                   jax.ShapeDtypeStruct((1, 1), jnp.float32)),
        grid=(nk,),
        in_specs=[
            pl.BlockSpec(memory_space=pltpu.MemorySpace.SMEM),  # lam (1,)
            pl.BlockSpec((bsz, bsz), lambda k: (0, 0)),         # mix matrix f32
            pl.BlockSpec((bsz, tile_k), lambda k: (0, k)),      # x (bf16)
            pl.BlockSpec((tile_k, kp), lambda k: (k, 0)),       # w (bf16)
            pl.BlockSpec((1, kp), lambda k: (0, 0)),            # bias (f32)
            pl.BlockSpec((bsz, 1), lambda k: (0, 0)),           # labels (i32)
            pl.BlockSpec((bsz, 1), lambda k: (0, 0)),           # perm labels
        ],
        out_specs=(pl.BlockSpec((bsz, kp), lambda k: (0, 0)),   # logits (resident acc)
                   pl.BlockSpec((1, 1), lambda k: (0, 0))),     # loss
        compiler_params=pltpu.CompilerParams(
            dimension_semantics=("arbitrary",),                 # reduction axis
            vmem_limit_bytes=vmem_limit),
    )(lam, mix_mat, x_bf16, w_pad, b_pad, ya, yb)
    return logits, loss


# ---------------------------------------------------------------------------
# Progressive-learning wrapper (host-side stage bookkeeping + glue)
# ---------------------------------------------------------------------------
class ProgressiveLearningPallas:
    def __init__(self, n, m, rand_aug_transform_steps,
                 init_image_size, target_image_size,
                 init_magnitude, target_magnitude,
                 init_alpha, target_alpha,
                 init_dropout, target_dropout,
                 num_classes, feature_dim, key):
        self.num_total_steps = n
        self.num_stages = m
        self.steps_per_stage = n // m
        self.curr_stage = 0
        self.rand_aug_transform_steps = rand_aug_transform_steps

        self.image_size_range = [init_image_size, init_image_size, target_image_size]
        self.magnitude_range = [init_magnitude, init_magnitude, target_magnitude]
        self.alpha_range = [init_alpha, init_alpha, target_alpha]
        self.dropout_range = [init_dropout, init_dropout, target_dropout]
        self.target_magnitude = target_magnitude
        self.num_classes = num_classes
        self.feature_dim = feature_dim

        self.padded_classes = _round_up(num_classes, 128)
        self.tile_k, self.padded_dim, self.vmem_limit = _pick_tiling(
            feature_dim, self.padded_classes)

        # deterministic synthetic "model" parameters (linear classifier),
        # stored pre-padded once at init; weight kept in bf16 for the MXU GEMM.
        wkey, _ = jax.random.split(key)
        w = (jax.random.normal(wkey, (feature_dim, num_classes),
                               jnp.float32) * 0.02)
        w = jnp.pad(w, ((0, self.padded_dim - feature_dim),
                        (0, self.padded_classes - num_classes)))
        self.w = w.astype(jnp.bfloat16)
        self.b = jnp.zeros((1, self.padded_classes), jnp.float32)

    def update(self):
        self.curr_stage += 1
        frac = self.curr_stage / (self.num_stages - 1)
        for r, to_int in ((self.image_size_range, True),
                          (self.magnitude_range, False),
                          (self.alpha_range, False),
                          (self.dropout_range, False)):
            init, _, tgt = r
            cur = init + (tgt - init) * frac
            r[1] = int(cur) if to_int else cur

    def forward(self, x, y, curr_step, key):
        if curr_step > 0 and curr_step % self.steps_per_stage == 0:
            self.update()

        B = x.shape[0]
        magnitude = self.magnitude_range[1]
        alpha = self.alpha_range[1]
        # TODO(synk): progressive image resizing (image_size_range) and the
        # model's dropout schedule are not applied in this synthetic classifier.
        # TODO(synk): the full RandAugment policy (rotate/shear/posterize/...)
        # has no clean Pallas equivalent; approximated by a magnitude-scaled
        # brightness op folded into the MixUp row-mixing matrix.
        brightness = 1.0 + 0.1 * magnitude / max(self.target_magnitude, 1e-6)

        lam_key, perm_key = jax.random.split(key)
        lam = jax.random.beta(lam_key, alpha, alpha).astype(jnp.float32)  # MixUp lambda
        perm = jax.random.permutation(perm_key, B)

        # Brightness + MixUp as a tiny [B,B] row-mixing matrix, applied to the
        # GEMM accumulator in-kernel:  mix = bright * (lam*I + (1-lam)*P)
        eye = jnp.eye(B, dtype=jnp.float32)
        mix_mat = brightness * (lam * eye + (1.0 - lam) * eye[perm])

        # Stream x in bf16; pad the feature dim only if it isn't a tile multiple.
        x_flat = x.reshape(B, -1).astype(jnp.bfloat16)
        if x_flat.shape[1] != self.padded_dim:
            x_flat = jnp.pad(
                x_flat, ((0, 0), (0, self.padded_dim - x_flat.shape[1])))

        ya = y.astype(jnp.int32).reshape(B, 1)
        yb = y[perm].astype(jnp.int32).reshape(B, 1)
        lam_arr = jnp.reshape(lam, (1,))

        logits_p, loss = progressive_forward_pallas(
            lam_arr, mix_mat, x_flat, self.w, self.b, ya, yb,
            num_classes=self.num_classes, tile_k=self.tile_k,
            vmem_limit=self.vmem_limit)
        return logits_p[:, :self.num_classes], loss[0, 0]


if __name__ == "__main__":
    key = jax.random.PRNGKey(0)
    k_x, k_y, k_param, k_fwd = jax.random.split(key, 4)

    B, C, H, W = 2, 4, 16, 16
    num_classes = 16

    x = jax.random.normal(k_x, (B, C, H, W), jnp.float32)
    y = jax.random.randint(k_y, (B,), 0, num_classes)

    module = ProgressiveLearningPallas(
        n=100, m=5, rand_aug_transform_steps=2,
        init_image_size=H, target_image_size=H,
        init_magnitude=5.0, target_magnitude=10.0,
        init_alpha=0.2, target_alpha=0.4,
        init_dropout=0.1, target_dropout=0.3,
        num_classes=num_classes, feature_dim=C * H * W, key=k_param)

    logits, loss = module.forward(x, y, curr_step=20, key=k_fwd)
    jax.block_until_ready((logits, loss))
    print("KERNEL_OK")
</pallas_src>

<mosaic_0001>
module attributes {stable_mosaic.version = 11 : i64} {
  func.func @_fused_kernel(%arg0: i32, %arg1: memref<1xf32, #tpu.memory_space<smem>>, %arg2: memref<2x2xf32, #tpu.memory_space<vmem>>, %arg3: memref<2x1024xbf16, #tpu.memory_space<vmem>>, %arg4: memref<1024x128xbf16, #tpu.memory_space<vmem>>, %arg5: memref<1x128xf32, #tpu.memory_space<vmem>>, %arg6: memref<2x1xi32, #tpu.memory_space<vmem>>, %arg7: memref<2x1xi32, #tpu.memory_space<vmem>>, %arg8: memref<2x128xf32, #tpu.memory_space<vmem>>, %arg9: memref<1x1xf32, #tpu.memory_space<vmem>>) attributes {dimension_semantics = [#tpu.dimension_semantics<arbitrary>], iteration_bounds = array<i64: 1>, scalar_prefetch = 0 : i64, scratch_operands = 0 : i64, tpu.core_type = #tpu.core_type<tc>, window_params = [{transform_indices = @transform_0, window_bounds = array<i64: 1>}, {pipeline_mode = #tpu.pipeline_mode<synchronous>, transform_indices = @transform_1, window_bounds = array<i64: 2, 2>}, {transform_indices = @transform_2, window_bounds = array<i64: 2, 1024>}, {transform_indices = @transform_3, window_bounds = array<i64: 1024, 128>}, {pipeline_mode = #tpu.pipeline_mode<synchronous>, transform_indices = @transform_4, window_bounds = array<i64: 1, 128>}, {pipeline_mode = #tpu.pipeline_mode<synchronous>, transform_indices = @transform_5, window_bounds = array<i64: 2, 1>}, {pipeline_mode = #tpu.pipeline_mode<synchronous>, transform_indices = @transform_6, window_bounds = array<i64: 2, 1>}, {pipeline_mode = #tpu.pipeline_mode<synchronous>, transform_indices = @transform_7, window_bounds = array<i64: 2, 128>}, {pipeline_mode = #tpu.pipeline_mode<synchronous>, transform_indices = @transform_8, window_bounds = array<i64: 1, 1>}]} {
    %c0_i32 = arith.constant 0 : i32
    %0 = arith.cmpi eq, %arg0, %c0_i32 : i32
    %1 = arith.extui %0 : i1 to i32
    %c0_i32_0 = arith.constant 0 : i32
    %2 = arith.cmpi ne, %1, %c0_i32_0 : i32
    scf.if %2 {
      %cst_10 = arith.constant 0.000000e+00 : f32
      %12 = vector.broadcast %cst_10 : f32 to vector<2x128xf32>
      %c0_11 = arith.constant 0 : index
      %c0_12 = arith.constant 0 : index
      %13 = vector.load %arg8[%c0_11, %c0_12] : memref<2x128xf32, #tpu.memory_space<vmem>>, vector<2x128xf32>
      tpu.vector_store %arg8[%c0_11, %c0_12], %12 {strides = array<i32>} : memref<2x128xf32, #tpu.memory_space<vmem>>, vector<2x128xf32>,
    } else {
    }
    %c0 = arith.constant 0 : index
    %c0_1 = arith.constant 0 : index
    %3 = vector.load %arg8[%c0, %c0_1] : memref<2x128xf32, #tpu.memory_space<vmem>>, vector<2x128xf32>
    %c0_2 = arith.constant 0 : index
    %c0_3 = arith.constant 0 : index
    %4 = vector.load %arg3[%c0_2, %c0_3] : memref<2x1024xbf16, #tpu.memory_space<vmem>>, vector<2x1024xbf16>
    %c0_4 = arith.constant 0 : index
    %c0_5 = arith.constant 0 : index
    %5 = vector.load %arg4[%c0_4, %c0_5] : memref<1024x128xbf16, #tpu.memory_space<vmem>>, vector<1024x128xbf16>
    %cst = arith.constant dense<0.000000e+00> : vector<2x128xf32>
    %6 = tpu.matmul %4, %5, %cst {dimension_numbers = #tpu.dot_dimension_numbers<[1], [0], [0], [1], [0, 0, 1, 1], [], []>} : vector<2x1024xbf16>, vector<1024x128xbf16>, vector<2x128xf32> -> vector<2x128xf32>
    %7 = arith.addf %3, %6 : vector<2x128xf32>
    %c0_6 = arith.constant 0 : index
    %c0_7 = arith.constant 0 : index
    %8 = vector.load %arg8[%c0_6, %c0_7] : memref<2x128xf32, #tpu.memory_space<vmem>>, vector<2x128xf32>
    tpu.vector_store %arg8[%c0_6, %c0_7], %7 {strides = array<i32>} : memref<2x128xf32, #tpu.memory_space<vmem>>, vector<2x128xf32>,
    %c0_i32_8 = arith.constant 0 : i32
    %9 = arith.cmpi eq, %arg0, %c0_i32_8 : i32
    %10 = arith.extui %9 : i1 to i32
    %c0_i32_9 = arith.constant 0 : i32
    %11 = arith.cmpi ne, %10, %c0_i32_9 : i32
    scf.if %11 {
      %c0_10 = arith.constant 0 : index
      %12 = memref.load %arg1[%c0_10] : memref<1xf32, #tpu.memory_space<smem>>
      %c0_11 = arith.constant 0 : index
      %c0_12 = arith.constant 0 : index
      %13 = vector.load %arg2[%c0_11, %c0_12] : memref<2x2xf32, #tpu.memory_space<vmem>>, vector<2x2xf32>
      %c0_13 = arith.constant 0 : index
      %c0_14 = arith.constant 0 : index
      %14 = vector.load %arg8[%c0_13, %c0_14] : memref<2x128xf32, #tpu.memory_space<vmem>>, vector<2x128xf32>
      %cst_15 = arith.constant dense<0.000000e+00> : vector<2x128xf32>
      %15 = tpu.matmul %13, %14, %cst_15 {dimension_numbers = #tpu.dot_dimension_numbers<[1], [0], [0], [1], [0, 0, 1, 1], [], []>} : vector<2x2xf32>, vector<2x128xf32>, vector<2x128xf32> -> vector<2x128xf32>
      %c0_16 = arith.constant 0 : index
      %c0_17 = arith.constant 0 : index
      %16 = vector.load %arg5[%c0_16, %c0_17] : memref<1x128xf32, #tpu.memory_space<vmem>>, vector<1x128xf32>
      %17 = vector.broadcast %16 : vector<1x128xf32> to vector<2x128xf32>
      %18 = arith.addf %15, %17 : vector<2x128xf32>
      %c0_18 = arith.constant 0 : index
      %c0_19 = arith.constant 0 : index
      %19 = vector.load %arg8[%c0_18, %c0_19] : memref<2x128xf32, #tpu.memory_space<vmem>>, vector<2x128xf32>
      tpu.vector_store %arg8[%c0_18, %c0_19], %18 {strides = array<i32>} : memref<2x128xf32, #tpu.memory_space<vmem>>, vector<2x128xf32>,
      %20 = tpu.iota {dimensions = array<i32: 1>} : vector<2x128xi32>
      %c16_i32 = arith.constant 16 : i32
      %21 = vector.broadcast %c16_i32 : i32 to vector<2x128xi32>
      %22 = arith.cmpi slt, %20, %21 : vector<2x128xi32>
      %cst_20 = arith.constant -1.000000e+30 : f32
      %23 = vector.broadcast %cst_20 : f32 to vector<2x128xf32>
      %24 = arith.select %22, %18, %23 : vector<2x128xi1>, vector<2x128xf32>
      %cst_21 = arith.constant dense<0xFF800000> : vector<2xf32>
      %25 = vector.multi_reduction <maximumf>, %24, %cst_21 [1] : vector<2x128xf32> to vector<2xf32>
      %26 = vector.shape_cast %25 : vector<2xf32> to vector<2x1xf32>
      %27 = vector.broadcast %26 : vector<2x1xf32> to vector<2x128xf32>
      %28 = arith.subf %24, %27 : vector<2x128xf32>
      %29 = math.exp %28 : vector<2x128xf32>
      %cst_22 = arith.constant 0.000000e+00 : f32
      %30 = vector.broadcast %cst_22 : f32 to vector<2x128xf32>
      %31 = arith.select %22, %29, %30 : vector<2x128xi1>, vector<2x128xf32>
      %cst_23 = arith.constant dense<0.000000e+00> : vector<2xf32>
      %32 = vector.multi_reduction <add>, %31, %cst_23 [1] : vector<2x128xf32> to vector<2xf32>
      %33 = vector.shape_cast %32 : vector<2xf32> to vector<2x1xf32>
      %34 = math.log %33 : vector<2x1xf32>
      %35 = vector.broadcast %34 : vector<2x1xf32> to vector<2x128xf32>
      %36 = arith.subf %28, %35 : vector<2x128xf32>
      %c0_24 = arith.constant 0 : index
      %c0_25 = arith.constant 0 : index
      %37 = vector.load %arg6[%c0_24, %c0_25] : memref<2x1xi32, #tpu.memory_space<vmem>>, vector<2x1xi32>
      %38 = vector.broadcast %37 : vector<2x1xi32> to vector<2x128xi32>
      %39 = arith.cmpi eq, %20, %38 : vector<2x128xi32>
      %cst_26 = arith.constant 0.000000e+00 : f32
      %40 = vector.broadcast %cst_26 : f32 to vector<2x128xf32>
      %41 = arith.select %39, %36, %40 : vector<2x128xi1>, vector<2x128xf32>
      %cst_27 = arith.constant dense<0.000000e+00> : vector<2xf32>
      %42 = vector.multi_reduction <add>, %41, %cst_27 [1] : vector<2x128xf32> to vector<2xf32>
      %43 = vector.shape_cast %42 : vector<2xf32> to vector<2x1xf32>
      %cst_28 = arith.constant 0.000000e+00 : f32
      %44 = vector.broadcast %cst_28 : f32 to vector<2x1xf32>
      %45 = arith.subf %44, %43 : vector<2x1xf32>
      %c0_29 = arith.constant 0 : index
      %c0_30 = arith.constant 0 : index
      %46 = vector.load %arg7[%c0_29, %c0_30] : memref<2x1xi32, #tpu.memory_space<vmem>>, vector<2x1xi32>
      %47 = vector.broadcast %46 : vector<2x1xi32> to vector<2x128xi32>
      %48 = arith.cmpi eq, %20, %47 : vector<2x128xi32>
      %cst_31 = arith.constant 0.000000e+00 : f32
      %49 = vector.broadcast %cst_31 : f32 to vector<2x128xf32>
      %50 = arith.select %48, %36, %49 : vector<2x128xi1>, vector<2x128xf32>
      %cst_32 = arith.constant dense<0.000000e+00> : vector<2xf32>
      %51 = vector.multi_reduction <add>, %50, %cst_32 [1] : vector<2x128xf32> to vector<2xf32>
      %52 = vector.shape_cast %51 : vector<2xf32> to vector<2x1xf32>
      %cst_33 = arith.constant 0.000000e+00 : f32
      %53 = vector.broadcast %cst_33 : f32 to vector<2x1xf32>
      %54 = arith.subf %53, %52 : vector<2x1xf32>
      %55 = vector.broadcast %12 : f32 to vector<2x1xf32>
      %56 = arith.mulf %55, %45 : vector<2x1xf32>
      %cst_34 = arith.constant 1.000000e+00 : f32
      %57 = arith.subf %cst_34, %12 : f32
      %58 = vector.broadcast %57 : f32 to vector<2x1xf32>
      %59 = arith.mulf %58, %54 : vector<2x1xf32>
      %60 = arith.addf %56, %59 : vector<2x1xf32>
      %61 = vector.shape_cast %60 : vector<2x1xf32> to vector<1x2x1xf32>
      %cst_35 = arith.constant dense<0.000000e+00> : vector<1xf32>
      %62 = vector.multi_reduction <add>, %61, %cst_35 [1, 2] : vector<1x2x1xf32> to vector<1xf32>
      %63 = vector.shape_cast %62 : vector<1xf32> to vector<1x1x1xf32>
      %64 = vector.extract %63[0, 0, 0] : f32 from vector<1x1x1xf32>
      %cst_36 = arith.constant 2.000000e+00 : f32
      %65 = arith.divf %64, %cst_36 : f32
      %66 = vector.broadcast %65 : f32 to vector<1x1xf32>
      %c0_37 = arith.constant 0 : index
      %c0_38 = arith.constant 0 : index
      %67 = vector.load %arg9[%c0_37, %c0_38] : memref<1x1xf32, #tpu.memory_space<vmem>>, vector<1x1xf32>
      tpu.vector_store %arg9[%c0_37, %c0_38], %66 {strides = array<i32>} : memref<1x1xf32, #tpu.memory_space<vmem>>, vector<1x1xf32>,
    } else {
    }
    return
  }
  func.func @transform_0(%arg0: i32) -> i32 {
    %c0_i32 = arith.constant 0 : i32
    %c0_i32_0 = arith.constant 0 : i32
    return %c0_i32 : i32
  }
  func.func @transform_1(%arg0: i32) -> (i32, i32) {
    %c0_i32 = arith.constant 0 : i32
    %c0_i32_0 = arith.constant 0 : i32
    %c0_i32_1 = arith.constant 0 : i32
    return %c0_i32, %c0_i32_0 : i32, i32
  }
  func.func @transform_2(%arg0: i32) -> (i32, i32) {
    %c0_i32 = arith.constant 0 : i32
    %c0_i32_0 = arith.constant 0 : i32
    return %c0_i32, %arg0 : i32, i32
  }
  func.func @transform_3(%arg0: i32) -> (i32, i32) {
    %c0_i32 = arith.constant 0 : i32
    %c0_i32_0 = arith.constant 0 : i32
    return %arg0, %c0_i32 : i32, i32
  }
  func.func @transform_4(%arg0: i32) -> (i32, i32) {
    %c0_i32 = arith.constant 0 : i32
    %c0_i32_0 = arith.constant 0 : i32
    %c0_i32_1 = arith.constant 0 : i32
    return %c0_i32, %c0_i32_0 : i32, i32
  }
  func.func @transform_5(%arg0: i32) -> (i32, i32) {
    %c0_i32 = arith.constant 0 : i32
    %c0_i32_0 = arith.constant 0 : i32
    %c0_i32_1 = arith.constant 0 : i32
    return %c0_i32, %c0_i32_0 : i32, i32
  }
  func.func @transform_6(%arg0: i32) -> (i32, i32) {
    %c0_i32 = arith.constant 0 : i32
    %c0_i32_0 = arith.constant 0 : i32
    %c0_i32_1 = arith.constant 0 : i32
    return %c0_i32, %c0_i32_0 : i32, i32
  }
  func.func @transform_7(%arg0: i32) -> (i32, i32) {
    %c0_i32 = arith.constant 0 : i32
    %c0_i32_0 = arith.constant 0 : i32
    %c0_i32_1 = arith.constant 0 : i32
    return %c0_i32, %c0_i32_0 : i32, i32
  }
  func.func @transform_8(%arg0: i32) -> (i32, i32) {
    %c0_i32 = arith.constant 0 : i32
    %c0_i32_0 = arith.constant 0 : i32
    %c0_i32_1 = arith.constant 0 : i32
    return %c0_i32, %c0_i32_0 : i32, i32
  }
}

</mosaic_0001>

<bundles_post_ra>
// kernel: tpu_custom_call.1
= control target key start
LH: loop header
LB: loop body
LE: loop exit
PB: predicated region body
PF: predicated region fallthrough
CT: control target
= control target key end

     0   :  { %15 = vsyncpa [#allocation4], 0  ;;  %s1654_s0 = inlined_call_operand.<no memory space> [shape: f32[1], index: 0, kind: input, shape index: {}]   ;;  %s1655_s1 = inlined_call_operand.hbm [shape: f32[2,2], index: 1, kind: input, shape index: {}]   ;;  %s1656_s2 = inlined_call_operand.hbm [shape: bf16[2,1024], index: 2, kind: input, shape index: {}]   ;;  %s1657_s3 = inlined_call_operand.hbm [shape: bf16[1024,128], index: 3, kind: input, shape index: {}]   ;;  %s1658_s4 = inlined_call_operand.hbm [shape: f32[1,128], index: 4, kind: input, shape index: {}]   ;;  %s1659_s5 = inlined_call_operand.hbm [shape: s32[2,1], index: 5, kind: input, shape index: {}]   ;;  %s1660_s6 = inlined_call_operand.hbm [shape: s32[2,1], index: 6, kind: input, shape index: {}]   ;;  %s1661_s7 = inlined_call_operand.hbm [shape: f32[2,128], index: 7, kind: output, shape index: {0}]   ;;  %s1662_s8 = inlined_call_operand.hbm [shape: f32[1,1], index: 8, kind: output, shape index: {1}]  }
   0x1   :  { %16 = vsyncpa [#allocation7], 0 }
   0x2   :  { %17 = vsyncpa [#allocation10], 0 }
   0x3   :  { %18 = vsyncpa [#allocation13], 0 }
   0x4   :  { %19 = vsyncpa [#allocation5], 0 }
   0x5   :  { %20 = vsyncpa [#allocation16], 0  ;;  %s1464_s27 = smov [#allocation6]   ;;  %s1465_s29 = smov [#allocation9]  }
   0x6   :  { %s39_s28 = sshll.u32 %s1464_s27, 4  ;;  %s61_s30 = sshll.u32 %s1465_s29, 4  ;;  %s40_s28 = int_to_ptr.vmem [resolvable:$true] %s39_s28  ;;  %s62_s30 = int_to_ptr.vmem [resolvable:$true] %s61_s30 }
   0x7   :  { %s1276_s11 = scalar_lea.hbm %s1656_s2, 128 }
   0x8   :  { %p1277_p0 = scmp.ne.s32.totalorder %s1656_s2, %s1276_s11  ;;  %p1280_p1 = scmp.lt.u32.totalorder %s1276_s11, %s1656_s2 }
   0xa   :  { %p1282_p2 = pnand %p1280_p1, %p1277_p0 }
   0xc   :  { %1285 = shalt.err (!%p1282_p2)
}
   0xd   :  { %s1286_s16 = scalar_lea.vmem %s40_s28, 128  ;;  %p1291_p4 = scmp.lt.s32.totalorder %s40_s28, %s40_s28 }
   0xe   :  { %p1287_p3 = scmp.ne.s32.totalorder %s40_s28, %s1286_s16  ;;  %p1292_p5 = scmp.lt.s32.totalorder %s1286_s16, %s1286_s16 }
  0x10   :  { %p1293_p6 = por %p1292_p5, %p1291_p4 }
  0x12   :  { %p1294_p7 = pnand %p1293_p6, %p1287_p3 }
  0x14   :  { %1297 = shalt.err (!%p1294_p7)
}
  0x15   :  { %42 = dma.hbm_to_vmem [thread:$0]  %s1656_s2, 128, %s40_s28, [#allocation7]  }
  0x16   :  { %s1298_s21 = scalar_lea.hbm %s1658_s4, 16 }
  0x17   :  { %p1299_p8 = scmp.ne.s32.totalorder %s1658_s4, %s1298_s21  ;;  %p1302_p9 = scmp.lt.u32.totalorder %s1298_s21, %s1658_s4 }
  0x19   :  { %p1304_p10 = pnand %p1302_p9, %p1299_p8 }
  0x1b   :  { %1307 = shalt.err (!%p1304_p10)
}
  0x1c   :  { %s1308_s26 = scalar_lea.vmem %s62_s30, 16  ;;  %s1312_s27 = scalar_lea.vmem %s62_s30, 32 }
  0x1d   :  { %p1309_p11 = scmp.ne.s32.totalorder %s62_s30, %s1308_s26  ;;  %p1313_p12 = scmp.lt.s32.totalorder %s62_s30, %s62_s30 }
  0x1e   :  { %p1314_p13 = scmp.lt.s32.totalorder %s1312_s27, %s1308_s26 }
  0x20   :  { %p1315_p0 = por %p1314_p13, %p1313_p12 }
  0x22   :  { %p1316_p1 = pnand %p1315_p0, %p1309_p11 }
  0x24   :  { %1319 = shalt.err (!%p1316_p1)
}
  0x25   :  { %64 = dma.hbm_to_vmem [thread:$0]  %s1658_s4, 16, %s62_s30, [#allocation10]  }
  0x26   :  { %s1466_s29 = smov [#allocation3]   ;;  %s1467_s10 = smov [#allocation8]  }
  0x27   :  { %s29_s9 = sshll.u32 %s1466_s29, 4  ;;  %s48_s11 = sshll.u32 %s1467_s10, 4  ;;  %s30_s9 = int_to_ptr.vmem [resolvable:$true] %s29_s9  ;;  %s1547_s11 = int_to_ptr.vmem [resolvable:$true] %s48_s11 }
  0x28   :  { %s1320_s14 = scalar_lea.hbm %s1655_s1, 32 }
  0x29   :  { %p1321_p2 = scmp.ne.s32.totalorder %s1655_s1, %s1320_s14  ;;  %p1324_p3 = scmp.lt.u32.totalorder %s1320_s14, %s1655_s1 }
  0x2b   :  { %p1326_p4 = pnand %p1324_p3, %p1321_p2 }
  0x2d   :  { %1329 = shalt.err (!%p1326_p4)
}
  0x2e   :  { %s1330_s4 = scalar_lea.vmem %s30_s9, 32  ;;  %p1335_p6 = scmp.lt.s32.totalorder %s30_s9, %s30_s9 }
  0x2f   :  { %p1331_p5 = scmp.ne.s32.totalorder %s30_s9, %s1330_s4  ;;  %p1336_p7 = scmp.lt.s32.totalorder %s1330_s4, %s1330_s4 }
  0x31   :  { %p1337_p8 = por %p1336_p7, %p1335_p6 }
  0x33   :  { %p1338_p9 = pnand %p1337_p8, %p1331_p5 }
  0x35   :  { %1341 = shalt.err (!%p1338_p9)
}
  0x36   :  { %32 = dma.hbm_to_vmem [thread:$0]  %s1655_s1, 32, %s30_s9, [#allocation4]  }
  0x37   :  { %s1342_s22 = scalar_lea.hbm %s1657_s3, 8192 }
  0x38   :  { %p1343_p10 = scmp.ne.s32.totalorder %s1657_s3, %s1342_s22  ;;  %p1346_p11 = scmp.lt.u32.totalorder %s1342_s22, %s1657_s3 }
  0x3a   :  { %p1348_p12 = pnand %p1346_p11, %p1343_p10 }
  0x3c   :  { %1351 = shalt.err (!%p1348_p12)
}
  0x3d   :  { %s1352_s27 = scalar_lea.vmem %s1547_s11, 8192  ;;  %p1357_p0 = scmp.lt.s32.totalorder %s1547_s11, %s1547_s11 }
  0x3e   :  { %p1353_p13 = scmp.ne.s32.totalorder %s1547_s11, %s1352_s27  ;;  %p1358_p1 = scmp.lt.s32.totalorder %s1352_s27, %s1352_s27 }
  0x40   :  { %p1359_p2 = por %p1358_p1, %p1357_p0 }
  0x42   :  { %p1360_p3 = pnand %p1359_p2, %p1353_p13 }
  0x44   :  { %1363 = shalt.err (!%p1360_p3)
}
  0x45   :  { %s1468_s1 = smov 64   ;;  %s1469_s2 = smov 4  }
  0x46   :  { %54 = dma.hbm_to_vmem [thread:$0]  %s1657_s3, 8192, %s1547_s11, [#allocation7], %s1468_s1, %s1468_s1, %s1469_s2  }
  0x47   :  { %s1470_s9 = smov [#allocation11]   ;;  %s1471_s12 = smov [#allocation12]  }
  0x48   :  { %s71_s10 = sshll.u32 %s1470_s9, 4  ;;  %s81_s13 = sshll.u32 %s1471_s12, 4  ;;  %s72_s10 = int_to_ptr.vmem [resolvable:$true] %s71_s10  ;;  %s82_s13 = int_to_ptr.vmem [resolvable:$true] %s81_s13 }
  0x49   :  { %s1364_s16 = scalar_lea.hbm %s1659_s5, 32 }
  0x4a   :  { %p1365_p4 = scmp.ne.s32.totalorder %s1659_s5, %s1364_s16  ;;  %p1368_p5 = scmp.lt.u32.totalorder %s1364_s16, %s1659_s5 }
  0x4c   :  { %p1370_p6 = pnand %p1368_p5, %p1365_p4 }
  0x4e   :  { %1373 = shalt.err (!%p1370_p6)
}
  0x4f   :  { %s1374_s3 = scalar_lea.vmem %s72_s10, 32  ;;  %p1379_p8 = scmp.lt.s32.totalorder %s72_s10, %s72_s10 }
  0x50   :  { %p1375_p7 = scmp.ne.s32.totalorder %s72_s10, %s1374_s3  ;;  %p1380_p9 = scmp.lt.s32.totalorder %s1374_s3, %s1374_s3 }
  0x52   :  { %p1381_p10 = por %p1380_p9, %p1379_p8 }
  0x54   :  { %p1382_p11 = pnand %p1381_p10, %p1375_p7 }
  0x56   :  { %1385 = shalt.err (!%p1382_p11)
}
  0x57   :  { %74 = dma.hbm_to_vmem [thread:$0]  %s1659_s5, 32, %s72_s10, [#allocation10]  }
  0x58   :  { %s1386_s22 = scalar_lea.hbm %s1660_s6, 32 }
  0x59   :  { %p1387_p12 = scmp.ne.s32.totalorder %s1660_s6, %s1386_s22  ;;  %p1390_p13 = scmp.lt.u32.totalorder %s1386_s22, %s1660_s6 }
  0x5b   :  { %p1392_p0 = pnand %p1390_p13, %p1387_p12 }
  0x5d   :  { %1395 = shalt.err (!%p1392_p0)
}
  0x5e   :  { %s1396_s27 = scalar_lea.vmem %s82_s13, 32  ;;  %p1401_p2 = scmp.lt.s32.totalorder %s82_s13, %s82_s13 }
  0x5f   :  { %p1397_p1 = scmp.ne.s32.totalorder %s82_s13, %s1396_s27  ;;  %p1402_p3 = scmp.lt.s32.totalorder %s1396_s27, %s1396_s27 }
  0x61   :  { %p1403_p4 = por %p1402_p3, %p1401_p2 }
  0x63   :  { %p1404_p5 = pnand %p1403_p4, %p1397_p1 }
  0x65   :  { %1407 = shalt.err (!%p1404_p5)
}
  0x66   :  { %84 = dma.hbm_to_vmem [thread:$0]  %s1660_s6, 32, %s82_s13, [#allocation13]  }
  0x67   :  { %1452 = dma.done.wait [#allocation4], 32  }
  0x68   :  { %1453 = vsyncadd [#allocation4], 4294967264 }
  0x69   :  { %1454 = dma.done.wait [#allocation7], 8320  }
  0x6a   :  { %1455 = vsyncadd [#allocation7], 4294958976 }
  0x6b   :  { %1456 = dma.done.wait [#allocation10], 48  }
  0x6c   :  { %1457 = vsyncadd [#allocation10], 4294967248 }
  0x6d   :  { %1458 = dma.done.wait [#allocation13], 32  }
  0x6e   :  { %1459 = vsyncadd [#allocation13], 4294967264  ;;  %v1207_v0 = vld [vmem:[#allocation8 + $0x40] sm:$0xff]   ;;  %v1211_v4 = vld [vmem:[#allocation8 + $0x48] sm:$0xff]   ;;  %v1472_v22 = vmov 1966171168   ;;  %v244_v24 = vlaneseq }
  0x6f   :  { %v1208_v1 = vld [vmem:[#allocation8 + $0xc0] sm:$0xff]   ;;  %1094 = vmatprep.subr.bf16.mxu0 %v1207_v0  ;;  %v1212_v5 = vld [vmem:[#allocation8 + $0xc8] sm:$0xff]   ;;  %v1215_v8 = vld [vmem:[#allocation8 + $0x50] sm:$0xff]   ;;  %v242_v23 = vunpack.c.l.s4 %v1472_v22  ;;  %vm1474_vm0 = vmmov 0   ;;  %vm860_vm1 = vcmask 1041408   ;;  %vm856_vm2 = vcmask 15360  }
  0x70   :  { %v1209_v2 = vld [vmem:[#allocation8] sm:$0xff]   ;;  %1116 = vmatprep.subr.bf16.mxu1 %v1208_v1  ;;  %v1213_v6 = vld [vmem:[#allocation8 + $0x8] sm:$0xff]   ;;  %v1216_v9 = vld [vmem:[#allocation8 + $0xd0] sm:$0xff]   ;;  %v245_v30 = vshrl.u32 %v244_v24, 7  ;;  %s974_s28 = ssub.f32 1.0, %s1654_s0  ;;  %vm978_vm6 = vcmask 1024  }
  0x71   :  { %v1210_v3 = vld [vmem:[#allocation8 + $0x80] sm:$0xff]   ;;  %1095 = vmatpush3.bf16.msra.mxu0 %v1209_v2  ;;  %v1214_v7 = vld [vmem:[#allocation8 + $0x88] sm:$0xff]   ;;  %v1217_v10 = vld [vmem:[#allocation8 + $0x10] sm:$0xff]   ;;  %v243_v29 = vunpack.c.0.s8 %v242_v23  ;;  %s1476_s10 = smov [#allocation14]  }
  0x72   :  { %1117 = vmatpush3.bf16.msra.mxu1 %v1210_v3  ;;  %1096 = vmatprep.subr.bf16.mxu0 %v1211_v4  ;;  %v1218_v11 = vld [vmem:[#allocation8 + $0x90] sm:$0xff]   ;;  %v1219_v12 = vld [vmem:[#allocation8 + $0x58] sm:$0xff]   ;;  %v1223_v16 = vld [vmem:[#allocation8 + $0x60] sm:$0xff]   ;;  %s1001_s12 = sshll.u32 %s1476_s10, 4  ;;  %s1002_s12 = int_to_ptr.vmem [resolvable:$true] %s1001_s12 }
  0x73   :  { %1118 = vmatprep.subr.bf16.mxu1 %v1212_v5  ;;  %v1220_v13 = vld [vmem:[#allocation8 + $0xd8] sm:$0xff]   ;;  %v1224_v17 = vld [vmem:[#allocation8 + $0xe0] sm:$0xff]   ;;  %v1227_v20 = vld [vmem:[#allocation8 + $0x68] sm:$0xff]   ;;  %v1603_v35 = vsub.s32 %v243_v29, %v245_v30  ;;  %s1408_s13 = scalar_lea.vmem %s1002_s12, 32  ;;  %p1413_p7 = scmp.lt.s32.totalorder %s1002_s12, %s1002_s12 }
  0x74   :  { %v1221_v14 = vld [vmem:[#allocation8 + $0x18] sm:$0xff]   ;;  %v1225_v18 = vld [vmem:[#allocation8 + $0x20] sm:$0xff]   ;;  %v1228_v21 = vld [vmem:[#allocation8 + $0xe8] sm:$0xff]   ;;  %p1409_p6 = scmp.ne.s32.totalorder %s1002_s12, %s1408_s13  ;;  %p1414_p8 = scmp.lt.s32.totalorder %s1408_s13, %s1408_s13 }
  0x75   :  { %1097 = vmatpush3.bf16.msra.mxu0 %v1213_v6  ;;  %v1222_v15 = vld [vmem:[#allocation8 + $0x98] sm:$0xff]   ;;  %v1226_v19 = vld [vmem:[#allocation8 + $0xa0] sm:$0xff]   ;;  %v1229_v25 = vld [vmem:[#allocation8 + $0x28] sm:$0xff]  }
  0x76   :  { %1119 = vmatpush3.bf16.msra.mxu1 %v1214_v7  ;;  %1098 = vmatprep.subr.bf16.mxu0 %v1215_v8  ;;  %v1230_v26 = vld [vmem:[#allocation8 + $0xa8] sm:$0xff]   ;;  %v1231_v27 = vld [vmem:[#allocation8 + $0x70] sm:$0xff]   ;;  %v1235_v33 = vld [vmem:[#allocation8 + $0x78] sm:$0xff]   ;;  %p1415_p9 = por %p1414_p8, %p1413_p7 }
  0x77   :  { %1120 = vmatprep.subr.bf16.mxu1 %v1216_v9  ;;  %v1232_v28 = vld [vmem:[#allocation8 + $0xf0] sm:$0xff]   ;;  %v1236_v34 = vld [vmem:[#allocation8 + $0xf8] sm:$0xff]   ;;  %v1240_v41 = vld [vmem:[#allocation8 + $0x140] sm:$0xff]  }
  0x78   :  { %v1233_v31 = vld [vmem:[#allocation8 + $0x30] sm:$0xff]   ;;  %v1237_v36 = vld [vmem:[#allocation8 + $0x38] sm:$0xff]   ;;  %v1241_v42 = vld [vmem:[#allocation8 + $0x1c0] sm:$0xff]   ;;  %p1416_p10 = pnand %p1415_p9, %p1409_p6 }
  0x79   :  { %1099 = vmatpush3.bf16.msra.mxu0 %v1217_v10  ;;  %v1234_v32 = vld [vmem:[#allocation8 + $0xb0] sm:$0xff]   ;;  %v1238_v37 = vld [vmem:[#allocation8 + $0xb8] sm:$0xff]   ;;  %v1242_v47 = vld [vmem:[#allocation8 + $0x100] sm:$0xff]  }
  0x7a   :  { %1121 = vmatpush3.bf16.msra.mxu1 %v1218_v11  ;;  %1100 = vmatprep.subr.bf16.mxu0 %v1219_v12  ;;  %v110_v38 = vld [vmem:[#allocation6] sm:$0xff]  ;;  %v1244_v50 = vld [vmem:[#allocation8 + $0x148] sm:$0xff]   ;;  %v1243_v52 = vld [vmem:[#allocation8 + $0x180] sm:$0xff]  }
  0x7b   :  { %1122 = vmatprep.subr.bf16.mxu1 %v1220_v13  ;;  %v240_v39 = vcombine.high %v110_v38, %v110_v38  ;;  %v247_v40 = vrot.slane %v110_v38, %v1603_v35  ;;  %v1245_v54 = vld [vmem:[#allocation8 + $0x1c8] sm:$0xff]   ;;  %v1248_v57 = vld [vmem:[#allocation8 + $0x150] sm:$0xff]   ;;  %v1252_v61 = vld [vmem:[#allocation8 + $0x158] sm:$0xff]  }
  0x7c   :  { %v1246_v55 = vld [vmem:[#allocation8 + $0x108] sm:$0xff]   ;;  %v1249_v59 = vld [vmem:[#allocation8 + $0x1d0] sm:$0xff]   ;;  %v1253_v63 = vld [vmem:[#allocation8 + $0x1d8] sm:$0xff]  }
  0x7d   :  { %1101 = vmatpush3.bf16.msra.mxu0 %v1221_v14  ;;  %v255_v43 = vcombine.high %v247_v40, %v247_v40  ;;  %v263_v44 = vrot.slane %v247_v40, %v1603_v35  ;;  %v1608_v45 = vrot.slane %v240_v39, %v1603_v35  ;;  %v1247_v58 = vld [vmem:[#allocation8 + $0x188] sm:$0xff]   ;;  %v1250_v60 = vld [vmem:[#allocation8 + $0x110] sm:$0xff]   ;;  %v1254_v0 = vld [vmem:[#allocation8 + $0x118] sm:$0xff]  }
  0x7e   :  { %1123 = vmatpush3.bf16.msra.mxu1 %v1222_v15  ;;  %1102 = vmatprep.subr.bf16.mxu0 %v1223_v16  ;;  %v1251_v62 = vld [vmem:[#allocation8 + $0x190] sm:$0xff]   ;;  %v1256_v1 = vld [vmem:[#allocation8 + $0x160] sm:$0xff]   ;;  %v1255_v2 = vld [vmem:[#allocation8 + $0x198] sm:$0xff]  }
  0x7f   :  { %1124 = vmatprep.subr.bf16.mxu1 %v1224_v17  ;;  %v277_v46 = vrot.slane %v255_v43, %v1603_v35  ;;  %v256_v48 = vcombine.high %v1608_v45, %v1608_v45  ;;  %v285_v49 = vcombine.high %v263_v44, %v263_v44  ;;  %v1257_v3 = vld [vmem:[#allocation8 + $0x1e0] sm:$0xff]   ;;  %v1260_v5 = vld [vmem:[#allocation8 + $0x168] sm:$0xff]   ;;  %v1264_v9 = vld [vmem:[#allocation8 + $0x170] sm:$0xff]   ;;  %v270_v17 = vrot.slane %v1608_v45, %v1603_v35 }
  0x80   :  { %v1258_v4 = vld [vmem:[#allocation8 + $0x120] sm:$0xff]   ;;  %v1261_v7 = vld [vmem:[#allocation8 + $0x1e8] sm:$0xff]   ;;  %v1265_v11 = vld [vmem:[#allocation8 + $0x1f0] sm:$0xff]  }
  0x81   :  { %1103 = vmatpush3.bf16.msra.mxu0 %v1225_v18  ;;  %713 = vmatprep.mubr.bf16.mxu0 %v277_v46  ;;  %v287_v51 = vcombine.high %v277_v46, %v277_v46  ;;  %v284_v53 = vrot.slane %v256_v48, %v1603_v35  ;;  %v1259_v6 = vld [vmem:[#allocation8 + $0x1a0] sm:$0xff]   ;;  %v1262_v8 = vld [vmem:[#allocation8 + $0x128] sm:$0xff]   ;;  %v1266_v12 = vld [vmem:[#allocation8 + $0x130] sm:$0xff]  }
  0x82   :  { %1125 = vmatpush3.bf16.msra.mxu1 %v1226_v19  ;;  %1104 = vmatprep.subr.bf16.mxu0 %v1227_v20  ;;  %v1263_v10 = vld [vmem:[#allocation8 + $0x1a8] sm:$0xff]   ;;  %v1268_v13 = vld [vmem:[#allocation8 + $0x178] sm:$0xff]   ;;  %v1267_v14 = vld [vmem:[#allocation8 + $0x1b0] sm:$0xff]   ;;  %v286_v19 = vcombine.high %v270_v17, %v270_v17  ;;  %v1473_v20 = vmov 0.0  }
  0x83   :  { %1126 = vmatprep.subr.bf16.mxu1 %v1228_v21  ;;  %753 = vmatprep.mubr.bf16.mxu1 %v287_v51  ;;  %v288_v56 = vcombine.high %v284_v53, %v284_v53  ;;  %v1269_v15 = vld [vmem:[#allocation8 + $0x1f8] sm:$0xff]   ;;  %108 = vst [vmem:[#allocation14] sm:$0x3] %v1473_v20 }
  0x84   :  { %v1270_v16 = vld [vmem:[#allocation8 + $0x138] sm:$0xff]  }
  0x85   :  { %1105 = vmatpush3.bf16.msra.mxu0 %v1229_v25  ;;  %v1271_v18 = vld [vmem:[#allocation8 + $0x1b8] sm:$0xff]  }
  0x86   :  { %1127 = vmatpush3.bf16.msra.mxu1 %v1230_v26  ;;  %1106 = vmatprep.subr.bf16.mxu0 %v1231_v27 }
  0x87   :  { %1128 = vmatprep.subr.bf16.mxu1 %v1232_v28 }
  0x89   :  { %1107 = vmatpush3.bf16.msra.mxu0 %v1233_v31 }
  0x8a   :  { %1129 = vmatpush3.bf16.msra.mxu1 %v1234_v32  ;;  %1108 = vmatprep.subr.bf16.mxu0 %v1235_v33 }
  0x8b   :  { %1130 = vmatprep.subr.bf16.mxu1 %v1236_v34 }
  0x8d   :  { %1109 = vmatpush3.bf16.msra.mxu0 %v1237_v36 }
  0x8e   :  { %1131 = vmatpush3.bf16.msra.mxu1 %v1238_v37  ;;  %1138 = vmatprep.subr.bf16.mxu0 %v1240_v41 }
  0x8f   :  { %1160 = vmatprep.subr.bf16.mxu1 %v1241_v42 }
  0x90   :  { %714 = vmatmul.mubr.bf16.vlgmr.msra.gmra.mrb[0].mxu0 %v263_v44  ;;  %v109_v44 = vld [vmem:[#allocation14] sm:$0x3] }
  0x91   :  { %1139 = vmatpush3.bf16.msra.mxu0 %v1242_v47  ;;  %754 = vmatmul.mubr.bf16.vlgmr.msra.gmra.mrb[0].mxu1 %v285_v49  ;;  %v847_v47 = vld [vmem:[#allocation3] sm:$0x3]  ;;  %v936_v49 = vand.u32 127, %v244_v24 }
  0x92   :  { %1140 = vmatprep.subr.bf16.mxu0 %v1244_v50  ;;  %1161 = vmatpush3.bf16.msra.mxu1 %v1243_v52  ;;  %v1091_v50 = vld [vmem:[#allocation9] ss:$0 sm:$0xff] }
  0x93   :  { %793 = vmatprep.mubr.bf16.mxu0 %v284_v53  ;;  %1162 = vmatprep.subr.bf16.mxu1 %v1245_v54  ;;  %vm937_vm3 = vcmp.lt.s32.totalorder %v936_v49, 16 }
  0x94   :  { %833 = vmatprep.mubr.bf16.mxu1 %v288_v56  ;;  %v952_v56 = vld [vmem:[#allocation11] sm:$0x3] }
  0x95   :  { %1141 = vmatpush3.bf16.msra.mxu0 %v1246_v55 }
  0x96   :  { %1142 = vmatprep.subr.bf16.mxu0 %v1248_v57  ;;  %1163 = vmatpush3.bf16.msra.mxu1 %v1247_v58  ;;  %v1475_v57 = vmov 0   ;;  %v962_v58 = vld [vmem:[#allocation12] sm:$0x3] }
  0x97   :  { %1164 = vmatprep.subr.bf16.mxu1 %v1249_v59  ;;  %1205 = vset.pattern.permute.xlu1 %v1475_v57 }
  0x98   :  { %1206 = vset.pattern.permute.xlu0 %v1475_v57  ;;  %954 = vperm.xlu1 %1205, %v952_v56  }
  0x99   :  { %1143 = vmatpush3.bf16.msra.mxu0 %v1250_v60 }
  0x9a   :  { %1144 = vmatprep.subr.bf16.mxu0 %v1252_v61  ;;  %1165 = vmatpush3.bf16.msra.mxu1 %v1251_v62 }
  0x9b   :  { %1166 = vmatprep.subr.bf16.mxu1 %v1253_v63 }
  0x9c   :  { %964 = vperm.xlu1 %1205, %v962_v58  }
  0x9d   :  { %1145 = vmatpush3.bf16.msra.mxu0 %v1254_v0 }
  0x9e   :  { %1146 = vmatprep.subr.bf16.mxu0 %v1256_v1  ;;  %1167 = vmatpush3.bf16.msra.mxu1 %v1255_v2 }
  0x9f   :  { %1168 = vmatprep.subr.bf16.mxu1 %v1257_v3 }
  0xa1   :  { %1147 = vmatpush3.bf16.msra.mxu0 %v1258_v4 }
  0xa2   :  { %1148 = vmatprep.subr.bf16.mxu0 %v1260_v5  ;;  %1169 = vmatpush3.bf16.msra.mxu1 %v1259_v6 }
  0xa3   :  { %1170 = vmatprep.subr.bf16.mxu1 %v1261_v7 }
  0xa5   :  { %1149 = vmatpush3.bf16.msra.mxu0 %v1262_v8 }
  0xa6   :  { %1150 = vmatprep.subr.bf16.mxu0 %v1264_v9  ;;  %1171 = vmatpush3.bf16.msra.mxu1 %v1263_v10  ;;  %v975_v10 = vstv %s974_s28 }
  0xa7   :  { %1172 = vmatprep.subr.bf16.mxu1 %v1265_v11 }
  0xa9   :  { %1151 = vmatpush3.bf16.msra.mxu0 %v1266_v12  ;;  %v972_v12 = vstv %s1654_s0 }
  0xaa   :  { %1152 = vmatprep.subr.bf16.mxu0 %v1268_v13  ;;  %1173 = vmatpush3.bf16.msra.mxu1 %v1267_v14 }
  0xab   :  { %1174 = vmatprep.subr.bf16.mxu1 %v1269_v15 }
  0xad   :  { %1153 = vmatpush3.bf16.msra.mxu0 %v1270_v16 }
  0xae   :  { %1175 = vmatpush3.bf16.msra.mxu1 %v1271_v18  ;;  %1184 = vmatprep.subr.mxu0 %v1473_v20 }
  0xb0   :  { %794 = vmatmul.mubr.bf16.vlgmr.msra.gmra.mrb[4].mxu0 %v270_v17 }
  0xb1   :  { %834 = vmatmul.mubr.bf16.vlgmr.msra.gmra.mrb[4].mxu1 %v286_v19  ;;  %1186 = vmatprep.mubr.msk.f32.mxu0 %vm1474_vm0, %v1473_v20 }
 0x117   :  { %v955_v1 = vpop.permute.xlu1 %954 }
 0x118   :  { %vm956_vm4 = vcmp.eq.s32.totalorder %v936_v49, %v955_v1 }
 0x11b   :  { %v965_v4 = vpop.permute.xlu1 %964 }
 0x11c   :  { %vm966_vm5 = vcmp.eq.s32.totalorder %v936_v49, %v965_v4 }
 0x163   :  { %v1110_v21 = vpop.f32.mrb[0].mxu0 }
 0x164   :  { %v1111_v22 = vpop.f32.mrb[1].mxu0  ;;  %v1132_v23 = vpop.f32.mrb[0].mxu1 }
 0x165   :  { %v1112_v25 = vadd.f32 %v1111_v22, %v1110_v21  ;;  %v1113_v26 = vpop.f32.mrb[2].mxu0  ;;  %v1133_v27 = vpop.f32.mrb[1].mxu1 }
 0x166   :  { %v1114_v28 = vpop.f32.mrb[3].mxu0  ;;  %v1134_v29 = vadd.f32 %v1133_v27, %v1132_v23  ;;  %v1135_v30 = vpop.f32.mrb[2].mxu1 }
 0x167   :  { %v1136_v31 = vpop.f32.mrb[3].mxu1 }
 0x168   :  { %v756_v32 = vadd.f32 %v1134_v29, %v1112_v25 }
 0x183   :  { %v1154_v33 = vpop.f32.mrb[4].mxu0 }
 0x184   :  { %v1155_v34 = vpop.f32.mrb[5].mxu0  ;;  %v1176_v35 = vpop.f32.mrb[4].mxu1 }
 0x185   :  { %v1156_v36 = vadd.f32 %v1155_v34, %v1154_v33  ;;  %v1157_v37 = vpop.f32.mrb[6].mxu0  ;;  %v1177_v38 = vpop.f32.mrb[5].mxu1 }
 0x186   :  { %v1158_v39 = vpop.f32.mrb[7].mxu0  ;;  %v1178_v41 = vadd.f32 %v1177_v38, %v1176_v35  ;;  %v1179_v42 = vpop.f32.mrb[6].mxu1 }
 0x187   :  { %v796_v40 = vadd.f32 %v1156_v36, %v756_v32  ;;  %v1180_v43 = vpop.f32.mrb[7].mxu1 }
 0x189   :  { %v836_v45 = vadd.f32 %v1178_v41, %v796_v40 }
 0x18b   :  { %v841_v46 = vadd.f32 %v836_v45, %v109_v44 }
 0x18d   :  { %842 = vst [vmem:[#allocation14] sm:$0x3] %v841_v46 }
 0x194   :  { %v848_v48 = vld [vmem:[#allocation14] sm:$0x3] }
 0x195   :  { %1185 = vmatpush3.msk.msra.mxu0 %vm860_vm1, %v848_v48 }
 0x196   :  { %1187 = vmatmul.mubr.msk.f32.vlgmr.msra.gmra.mrb[8].mxu0 %vm856_vm2, %v847_v47 }
 0x269   :  { %v930_v51 = vpop.f32.mrb[8].mxu0 }
 0x26a   :  { %v931_v52 = vadd.f32 %v1091_v50, %v930_v51  ;;  %v1188_v53 = vpop.f32.mrb[9].mxu0 }
 0x26c   :  { %934 = vst [vmem:[#allocation14] sm:$0x3] %v931_v52  ;;  %v938_v54 = vsel %vm937_vm3, %v931_v52, -1e+30 }
 0x26d   :  { %v939_v55 = vsel %vm860_vm1, %v938_v54, -inf }
 0x26e   :  { %940 = vmax.xlane.f32.xlu0 %v939_v55 }
 0x2fb   :  { %v941_v59 = vpop.xlane.xlu0 %940 }
 0x2fc   :  { %v942_v24 = vsub.f32 %v938_v54, %v941_v59 }
 0x2fe   :  { %v943_v60 = vmul.f32 1.442695, %v942_v24 }
 0x300   :  { %1272 = vpow2.f32 %v943_v60 }
 0x30a   :  { %v1273_v61 = vpop.eup %1272 }
 0x30b   :  { %v945_v62 = vsel %vm937_vm3, %v1273_v61, 0.0 }
 0x30c   :  { %v946_v63 = vsel %vm860_vm1, %v945_v62, 0.0 }
 0x30d   :  { %947 = vadd.xlane.f32.xlu0 %v946_v63 }
 0x39a   :  { %v948_v0 = vpop.xlane.xlu0 %947 }
 0x39b   :  { %1274 = vlog2.f32 %v948_v0 }
 0x3a5   :  { %v1275_v2 = vpop.eup %1274 }
 0x3a6   :  { %v950_v3 = vmul.f32 0.6931472, %v1275_v2 }
 0x3a8   :  { %v951_v5 = vsub.f32 %v942_v24, %v950_v3 }
 0x3aa   :  { %v967_v6 = vsel %vm966_vm5, %v951_v5, 0.0  ;;  %v957_v7 = vsel %vm956_vm4, %v951_v5, 0.0 }
 0x3ab   :  { %v968_v8 = vsel %vm860_vm1, %v967_v6, 0.0  ;;  %v958_v9 = vsel %vm860_vm1, %v957_v7, 0.0 }
 0x3ac   :  { %969 = vadd.xlane.f32.xlu1 %v968_v8  ;;  %959 = vadd.xlane.f32.xlu0 %v958_v9 }
 0x439   :  { %v970_v11 = vpop.xlane.xlu1 %969  ;;  %v960_v13 = vpop.xlane.xlu0 %959 }
 0x43a   :  { %v971_v14 = vsub.f32 0.0, %v970_v11  ;;  %v961_v15 = vsub.f32 0.0, %v960_v13 }
 0x43c   :  { %v976_v16 = vmul.f32 %v975_v10, %v971_v14  ;;  %v973_v17 = vmul.f32 %v972_v12, %v961_v15 }
 0x43e   :  { %v977_v18 = vadd.f32 %v976_v16, %v973_v17 }
 0x440   :  { %v979_v19 = vsel %vm978_vm6, %v977_v18, 0.0 }
 0x441   :  { %980 = vadd.xlane.f32.xlu0 %v979_v19 }
 0x442   :  { %1419 = shalt.err (!%p1416_p10)
}
 0x443   :  { %s1420_s15 = scalar_lea.hbm %s1661_s7, 32 }
 0x444   :  { %p1421_p11 = scmp.ne.s32.totalorder %s1661_s7, %s1420_s15  ;;  %p1424_p12 = scmp.lt.u32.totalorder %s1420_s15, %s1661_s7 }
 0x446   :  { %p1426_p13 = pnand %p1424_p12, %p1421_p11 }
 0x448   :  { %1429 = shalt.err (!%p1426_p13)
}
 0x449   :  { %1004 = dma.vmem_to_hbm [thread:$0]  %s1002_s12, 32, %s1661_s7, [#allocation5]   ;;  %vm993_vm7 = vcmask 0  }
 0x44a   :  { %s1477_s11 = smov [#allocation15]  }
 0x44b   :  { %s1011_s19 = sshll.u32 %s1477_s11, 4  ;;  %s1012_s19 = int_to_ptr.vmem [resolvable:$true] %s1011_s19 }
 0x44c   :  { %s1430_s22 = scalar_lea.vmem %s1012_s19, 16  ;;  %s1434_s23 = scalar_lea.vmem %s1012_s19, 32 }
 0x44d   :  { %p1431_p0 = scmp.ne.s32.totalorder %s1012_s19, %s1430_s22  ;;  %p1435_p1 = scmp.lt.s32.totalorder %s1012_s19, %s1012_s19 }
 0x44e   :  { %p1436_p2 = scmp.lt.s32.totalorder %s1434_s23, %s1430_s22 }
 0x450   :  { %p1437_p3 = por %p1436_p2, %p1435_p1 }
 0x452   :  { %p1438_p4 = pnand %p1437_p3, %p1431_p0 }
 0x4ce   :  { %v981_v20 = vpop.xlane.xlu0 %980 }
 0x4cf   :  { %v982_v21 = vrot.slane %v981_v20, 4 }
 0x4d1   :  { %v983_v22 = vadd.f32 %v982_v21, %v981_v20 }
 0x4d3   :  { %v984_v23 = vrot.slane %v983_v22, 2 }
 0x4d5   :  { %v985_v25 = vadd.f32 %v984_v23, %v983_v22 }
 0x4d7   :  { %v986_v26 = vrot.slane %v985_v25, 1 }
 0x4d9   :  { %v987_v27 = vadd.f32 %v986_v26, %v985_v25 }
 0x4db   :  { %1189 = vpush %v987_v27 }
 0x50c   :  { %s1190_s20 = spop %1189 }
 0x50d   :  { %s991_s21 = smul.f32 0.5, %s1190_s20 }
 0x50f   :  { %v992_v28 = vstv %s991_s21 }
 0x510   :  { %994 = vst.msk [vmem:[#allocation15] sm:$0x1] %vm993_vm7, %v992_v28 }
 0x511   :  { %1441 = shalt.err (!%p1438_p4)
}
 0x512   :  { %s1442_s25 = scalar_lea.hbm %s1662_s8, 16 }
 0x513   :  { %p1443_p5 = scmp.ne.s32.totalorder %s1662_s8, %s1442_s25  ;;  %p1446_p6 = scmp.lt.u32.totalorder %s1442_s25, %s1662_s8 }
 0x515   :  { %p1448_p7 = pnand %p1446_p6, %p1443_p5 }
 0x517   :  { %1451 = shalt.err (!%p1448_p7)
}
 0x518   :  { %1014 = dma.vmem_to_hbm [thread:$0]  %s1012_s19, 16, %s1662_s8, [#allocation16]  }
 0x519   :  { %1460 = dma.done.wait [#allocation5], 32  }
 0x51a   :  { %1461 = vsyncadd [#allocation5], 4294967264 }
 0x51b   :  { %1462 = dma.done.wait [#allocation16], 16  }
 0x51c   :  { %1463 = vsyncadd [#allocation16], 4294967280 }
 0x51d   :  { %1021 = vsyncpa [#allocation4], 1 }
 0x51e   :  { %1022 = vsyncpa [#allocation7], 1 }
 0x51f   :  { %1023 = vsyncpa [#allocation10], 1 }
 0x520   :  { %1024 = vsyncpa [#allocation13], 1 }
 0x521   :  { %1025 = vsyncpa [#allocation5], 1 }
 0x522   :  { %1026 = vsyncpa [#allocation16], 1 }

</bundles_post_ra>
